<compile_context>
chip_gen: v6e
topology: v6e:2x2x1
jax: 0.10.0
libtpu: 0.0.40
codegen_flags: <defaults>
</compile_context>

<pallas_src>
import functools

import jax
import jax.numpy as jnp
import numpy as np
from jax.experimental import pallas as pl
from jax.experimental.pallas import tpu as pltpu

EPS = 1e-5


# ---------------------------------------------------------------------------
# Fused kernel: pass 0 = conv + bias + partial BN stats, pass 1 = BN + ReLU
# ---------------------------------------------------------------------------
def _fused_up_kernel(inv_count, ht_tiles, tile_h,
                     xpad_ref, band_ref, bias_ref, gamma_ref, beta_ref,
                     pfold_ref, out_ref, y_scr, stats_scr, ss_scr):
    # xpad_ref : (1, H+2, (W+2)*Cin)  padded rows of the current image
    # band_ref : (3, (W+2)*Cin, L)    banded conv weights, one K-chunk per kh
    # bias/gamma/beta : (1, L)        per-channel params tiled over W (lanes)
    # pfold_ref: (L, L)               lane -> channel fold matrix (used once)
    # out_ref  : (tile_h, L)          final output tile (lane-dense)
    # y_scr    : (N*H, L)             conv output, resident in VMEM between passes
    # stats_scr: (2, L)               running [sum; sum_sq] over rows
    # ss_scr   : (2, L)               [scale; shift] lane vectors
    p = pl.program_id(0)   # pass
    n = pl.program_id(1)   # image
    t = pl.program_id(2)   # row-tile within image

    if ht_tiles == 1:
        h0 = 0                                   # static -> static row slices
        m0 = n * tile_h
    else:
        h0 = t * tile_h
        m0 = (n * ht_tiles + t) * tile_h
    if tile_h % 8 == 0:
        m0 = pl.multiple_of(m0, 8)

    @pl.when(p == 0)
    def _conv_and_stats():
        @pl.when(jnp.logical_and(n == 0, t == 0))
        def _init():
            stats_scr[...] = jnp.zeros_like(stats_scr)

        # Three shifted row-slabs of the padded image (kernel rows kh = 0,1,2).
        r0 = xpad_ref[0, pl.ds(h0 + 0, tile_h), :]
        r1 = xpad_ref[0, pl.ds(h0 + 1, tile_h), :]
        r2 = xpad_ref[0, pl.ds(h0 + 2, tile_h), :]
        acc = jnp.dot(r0, band_ref[0], preferred_element_type=jnp.float32)
        acc = acc + jnp.dot(r1, band_ref[1], preferred_element_type=jnp.float32)
        acc = acc + jnp.dot(r2, band_ref[2], preferred_element_type=jnp.float32)
        acc = acc + bias_ref[...]

        y_scr[pl.ds(m0, tile_h), :] = acc

        s = jnp.sum(acc, axis=0, keepdims=True)
        sq = jnp.sum(acc * acc, axis=0, keepdims=True)
        stats_scr[...] = stats_scr[...] + jnp.concatenate([s, sq], axis=0)

    @pl.when(p == 1)
    def _normalize():
        @pl.when(jnp.logical_and(n == 0, t == 0))
        def _fold():                              # runs exactly once per call
            stats = stats_scr[...]                                  # (2, L)
            folded = jnp.dot(stats, pfold_ref[...],
                             preferred_element_type=jnp.float32)    # per-channel
            mean = folded[0:1, :] * inv_count
            var = folded[1:2, :] * inv_count - mean * mean          # biased var
            inv_std = jax.lax.rsqrt(var + EPS)
            scale = gamma_ref[...] * inv_std
            shift = beta_ref[...] - mean * scale
            ss_scr[...] = jnp.concatenate([scale, shift], axis=0)

        y = y_scr[pl.ds(m0, tile_h), :]
        out_ref[...] = jnp.maximum(y * ss_scr[0:1, :] + ss_scr[1:2, :], 0.0)


def _pick_tile_h(N, H):
    """Largest legal row tile: whole image whenever the tiling rules allow."""
    if H % 8 == 0 or N == 1:
        return H
    for t in range(H - 1, 0, -1):
        if H % t == 0 and t % 8 == 0:
            return t
    # TODO(synk): H not a multiple of 8 with N > 1 needs padded/masked output
    # tiling; not required for this module's shapes.
    raise ValueError(f"unsupported spatial size H={H} for batch N={N}")


@functools.partial(jax.jit, static_argnames=("tile_h",))
def up_forward(x_nchw, w_tconv, bias, gamma, beta, *, tile_h=None):
    """Pallas implementation of `up.forward`.

    x_nchw : (N, Cin, H, W)    float32 (PyTorch NCHW)
    w_tconv: (Cin, Cout, 3, 3) float32 (PyTorch ConvTranspose2d weight layout)
    bias, gamma, beta : (Cout,) float32
    returns: (N, Cout, H, W)   float32
    """
    N, Cin, H, W = x_nchw.shape
    Cout = w_tconv.shape[1]
    L = W * Cout                   # lane dimension of the banded matmul output
    KR = (W + 2) * Cin             # K-chunk per kernel row (kh)
    M = N * H

    if tile_h is None:
        tile_h = _pick_tile_h(N, H)
    assert H % tile_h == 0
    HT = H // tile_h

    # ---- glue (layout only): NCHW -> padded NHWC rows --------------------
    x_nhwc = jnp.transpose(x_nchw, (0, 2, 3, 1)).astype(jnp.float32)
    xpad_rows = jnp.pad(x_nhwc, ((0, 0), (1, 1), (1, 1), (0, 0))
                        ).reshape(N, H + 2, KR)

    # ---- glue: block-banded conv weights, split per kernel row (kh) ------
    # ConvTranspose2d(k=3, s=1, p=1) == "same" forward conv with flipped taps:
    #   Wf[a,b,ci,co] = Wt[ci,co,2-a,2-b]
    wf = jnp.transpose(jnp.flip(w_tconv, axis=(2, 3)), (2, 3, 0, 1)
                       ).astype(jnp.float32)                  # (3,3,Cin,Cout)
    ow = np.arange(W)
    wp = np.arange(W + 2)
    shift_sel = np.stack(
        [(wp[:, None] == ow[None, :] + b) for b in range(3)], axis=0
    ).astype(np.float32)                                      # (3, W+2, W)
    band = jnp.einsum("bpw,abio->apiwo", jnp.asarray(shift_sel), wf)
    band = band.reshape(3, KR, L)                             # 3 K-chunks
    # TODO(synk): for production W >> 16, block the banded contraction along W
    # (the band is only ~3/(W+2) dense, so wasted MXU FLOPs grow with W).

    # ---- glue: per-channel params in lane layout (tiled over W) ----------
    bias_lane = jnp.tile(bias.astype(jnp.float32), W).reshape(1, L)
    gamma_lane = jnp.tile(gamma.astype(jnp.float32), W).reshape(1, L)
    beta_lane = jnp.tile(beta.astype(jnp.float32), W).reshape(1, L)
    pfold = jnp.asarray(
        (np.arange(L)[:, None] % Cout == np.arange(L)[None, :] % Cout
         ).astype(np.float32))                                # (L, L), used once

    # TODO(synk): when the full conv output (M*L*4 B) no longer fits VMEM
    # comfortably, fall back to a two-call variant with y streamed through HBM.

    grid = (2, N, HT)   # (pass, image, row-tile); pass axis iterates first

    out_flat = pl.pallas_call(
        functools.partial(_fused_up_kernel, 1.0 / float(N * H * W), HT, tile_h),
        out_shape=jax.ShapeDtypeStruct((M, L), jnp.float32),
        grid=grid,
        in_specs=[
            # Padded image rows: one image per pass-0 step; pinned to image 0
            # during pass 1 so nothing is re-streamed.
            pl.BlockSpec((1, H + 2, KR), lambda p, n, t: ((1 - p) * n, 0, 0)),
            pl.BlockSpec((3, KR, L), lambda p, n, t: (0, 0, 0)),   # resident
            pl.BlockSpec((1, L), lambda p, n, t: (0, 0)),
            pl.BlockSpec((1, L), lambda p, n, t: (0, 0)),
            pl.BlockSpec((1, L), lambda p, n, t: (0, 0)),
            pl.BlockSpec((L, L), lambda p, n, t: (0, 0)),
        ],
        # All pass-0 steps alias output block 0 (one consecutive run, only ever
        # written by the first pass-1 step) -> the conv pass causes no HBM
        # output streaming; pass 1 writes each lane-dense tile exactly once.
        out_specs=pl.BlockSpec((tile_h, L),
                               lambda p, n, t: (p * (n * HT + t), 0)),
        scratch_shapes=[
            pltpu.VMEM((M, L), jnp.float32),   # conv output, resident over passes
            pltpu.VMEM((2, L), jnp.float32),   # running [sum; sum_sq]
            pltpu.VMEM((2, L), jnp.float32),   # [scale; shift]
        ],
        compiler_params=pltpu.CompilerParams(
            # Sequential pass / global-stat dependence -> all axes arbitrary.
            # TODO(synk): per-core partial stats (CMEM) would re-enable 2-TC
            # sharding on v7x.
            dimension_semantics=("arbitrary", "arbitrary", "arbitrary"),
            vmem_limit_bytes=32 * 1024 * 1024),
    )(xpad_rows, band, bias_lane, gamma_lane, beta_lane, pfold)

    # ---- glue: (N*H, W*Cout) -> NCHW --------------------------------------
    return jnp.transpose(out_flat.reshape(N, H, W, Cout), (0, 3, 1, 2))


# ---------------------------------------------------------------------------
# Independent numpy reference (scatter-form ConvTranspose2d + BN(train) + ReLU)
# ---------------------------------------------------------------------------
def _reference_forward(x_nchw, w_tconv, bias, gamma, beta):
    x = np.asarray(x_nchw, np.float32)
    wt = np.asarray(w_tconv, np.float32)
    N, Cin, H, W = x.shape
    Cout = wt.shape[1]
    y_full = np.zeros((N, Cout, H + 2, W + 2), np.float32)
    for kh in range(3):
        for kw in range(3):
            y_full[:, :, kh:kh + H, kw:kw + W] += np.einsum(
                "nchw,cd->ndhw", x, wt[:, :, kh, kw])
    y = y_full[:, :, 1:1 + H, 1:1 + W] \
        + np.asarray(bias, np.float32)[None, :, None, None]
    mean = y.mean(axis=(0, 2, 3), keepdims=True)
    var = ((y - mean) ** 2).mean(axis=(0, 2, 3), keepdims=True)
    y = (y - mean) / np.sqrt(var + EPS)
    y = y * np.asarray(gamma, np.float32)[None, :, None, None] \
        + np.asarray(beta, np.float32)[None, :, None, None]
    return np.maximum(y, 0.0)


if __name__ == "__main__":
    # small shapes consistent with the module: batch=2, in_ch=4, out_ch=8, 16x16
    N, Cin, Cout, H, W = 2, 4, 8, 16, 16

    key = jax.random.PRNGKey(0)
    kx, kw, kb, kg, kbt = jax.random.split(key, 5)

    x = jax.random.normal(kx, (N, Cin, H, W), jnp.float32)
    w_tconv = jax.random.normal(kw, (Cin, Cout, 3, 3), jnp.float32) * 0.1
    bias = jax.random.normal(kb, (Cout,), jnp.float32) * 0.1
    gamma = 1.0 + 0.1 * jax.random.normal(kg, (Cout,), jnp.float32)
    beta = 0.1 * jax.random.normal(kbt, (Cout,), jnp.float32)

    out = up_forward(x, w_tconv, bias, gamma, beta)   # default: whole-image tiles
    out = jax.block_until_ready(out)

    ref = _reference_forward(np.asarray(x), np.asarray(w_tconv),
                             np.asarray(bias), np.asarray(gamma),
                             np.asarray(beta))
    np.testing.assert_allclose(np.asarray(out), ref, atol=2e-3, rtol=2e-3)

    print("KERNEL_OK")
</pallas_src>

<mosaic_0001>
module attributes {stable_mosaic.version = 11 : i64} {
  func.func @_fused_up_kernel(%arg0: i32, %arg1: i32, %arg2: i32, %arg3: memref<1x18x72xf32, #tpu.memory_space<vmem>>, %arg4: memref<3x72x128xf32, #tpu.memory_space<vmem>>, %arg5: memref<1x128xf32, #tpu.memory_space<vmem>>, %arg6: memref<1x128xf32, #tpu.memory_space<vmem>>, %arg7: memref<1x128xf32, #tpu.memory_space<vmem>>, %arg8: memref<128x128xf32, #tpu.memory_space<vmem>>, %arg9: memref<16x128xf32, #tpu.memory_space<vmem>>, %arg10: memref<32x128xf32, #tpu.memory_space<vmem>>, %arg11: memref<2x128xf32, #tpu.memory_space<vmem>>, %arg12: memref<2x128xf32, #tpu.memory_space<vmem>>) attributes {dimension_semantics = [#tpu.dimension_semantics<arbitrary>, #tpu.dimension_semantics<arbitrary>, #tpu.dimension_semantics<arbitrary>], iteration_bounds = array<i64: 2, 2, 1>, scalar_prefetch = 0 : i64, scratch_operands = 3 : i64, tpu.core_type = #tpu.core_type<tc>, window_params = [{transform_indices = @transform_0, window_bounds = array<i64: 1, 18, 72>}, {pipeline_mode = #tpu.pipeline_mode<synchronous>, transform_indices = @transform_1, window_bounds = array<i64: 3, 72, 128>}, {pipeline_mode = #tpu.pipeline_mode<synchronous>, transform_indices = @transform_2, window_bounds = array<i64: 1, 128>}, {pipeline_mode = #tpu.pipeline_mode<synchronous>, transform_indices = @transform_3, window_bounds = array<i64: 1, 128>}, {pipeline_mode = #tpu.pipeline_mode<synchronous>, transform_indices = @transform_4, window_bounds = array<i64: 1, 128>}, {pipeline_mode = #tpu.pipeline_mode<synchronous>, transform_indices = @transform_5, window_bounds = array<i64: 128, 128>}, {transform_indices = @transform_6, window_bounds = array<i64: 16, 128>}]} {
    %c16_i32 = arith.constant 16 : i32
    %0 = arith.muli %arg1, %c16_i32 : i32
    %1 = tpu.assume_multiple %0, 8 : i32
    %c0_i32 = arith.constant 0 : i32
    %2 = arith.cmpi eq, %arg0, %c0_i32 : i32
    %3 = arith.extui %2 : i1 to i32
    %c0_i32_0 = arith.constant 0 : i32
    %4 = arith.cmpi ne, %3, %c0_i32_0 : i32
    scf.if %4 {
      %c0_i32_2 = arith.constant 0 : i32
      %8 = arith.cmpi eq, %arg1, %c0_i32_2 : i32
      %c0_i32_3 = arith.constant 0 : i32
      %9 = arith.cmpi eq, %arg2, %c0_i32_3 : i32
      %10 = arith.andi %8, %9 : i1
      %11 = arith.extui %10 : i1 to i32
      %c0_i32_4 = arith.constant 0 : i32
      %12 = arith.cmpi ne, %11, %c0_i32_4 : i32
      scf.if %12 {
        %cst_31 = arith.constant 0.000000e+00 : f32
        %44 = vector.broadcast %cst_31 : f32 to vector<2x128xf32>
        %c0_32 = arith.constant 0 : index
        %c0_33 = arith.constant 0 : index
        %45 = vector.load %arg11[%c0_32, %c0_33] : memref<2x128xf32, #tpu.memory_space<vmem>>, vector<2x128xf32>
        tpu.vector_store %arg11[%c0_32, %c0_33], %44 {strides = array<i32>} : memref<2x128xf32, #tpu.memory_space<vmem>>, vector<2x128xf32>,
      } else {
      }
      %c0 = arith.constant 0 : index
      %c0_5 = arith.constant 0 : index
      %c0_6 = arith.constant 0 : index
      %13 = vector.load %arg3[%c0, %c0_5, %c0_6] : memref<1x18x72xf32, #tpu.memory_space<vmem>>, vector<1x16x72xf32>
      %14 = vector.shape_cast %13 : vector<1x16x72xf32> to vector<16x72xf32>
      %c0_7 = arith.constant 0 : index
      %c1 = arith.constant 1 : index
      %c0_8 = arith.constant 0 : index
      %15 = vector.load %arg3[%c0_7, %c1, %c0_8] : memref<1x18x72xf32, #tpu.memory_space<vmem>>, vector<1x16x72xf32>
      %16 = vector.shape_cast %15 : vector<1x16x72xf32> to vector<16x72xf32>
      %c0_9 = arith.constant 0 : index
      %c2 = arith.constant 2 : index
      %c0_10 = arith.constant 0 : index
      %17 = vector.load %arg3[%c0_9, %c2, %c0_10] : memref<1x18x72xf32, #tpu.memory_space<vmem>>, vector<1x16x72xf32>
      %18 = vector.shape_cast %17 : vector<1x16x72xf32> to vector<16x72xf32>
      %c0_11 = arith.constant 0 : index
      %c0_12 = arith.constant 0 : index
      %c0_13 = arith.constant 0 : index
      %19 = vector.load %arg4[%c0_11, %c0_12, %c0_13] : memref<3x72x128xf32, #tpu.memory_space<vmem>>, vector<1x72x128xf32>
      %20 = vector.shape_cast %19 : vector<1x72x128xf32> to vector<72x128xf32>
      %cst = arith.constant dense<0.000000e+00> : vector<16x128xf32>
      %21 = tpu.matmul %14, %20, %cst {dimension_numbers = #tpu.dot_dimension_numbers<[1], [0], [0], [1], [0, 0, 1, 1], [], []>} : vector<16x72xf32>, vector<72x128xf32>, vector<16x128xf32> -> vector<16x128xf32>
      %c1_14 = arith.constant 1 : index
      %c0_15 = arith.constant 0 : index
      %c0_16 = arith.constant 0 : index
      %22 = vector.load %arg4[%c1_14, %c0_15, %c0_16] : memref<3x72x128xf32, #tpu.memory_space<vmem>>, vector<1x72x128xf32>
      %23 = vector.shape_cast %22 : vector<1x72x128xf32> to vector<72x128xf32>
      %cst_17 = arith.constant dense<0.000000e+00> : vector<16x128xf32>
      %24 = tpu.matmul %16, %23, %cst_17 {dimension_numbers = #tpu.dot_dimension_numbers<[1], [0], [0], [1], [0, 0, 1, 1], [], []>} : vector<16x72xf32>, vector<72x128xf32>, vector<16x128xf32> -> vector<16x128xf32>
      %25 = arith.addf %21, %24 : vector<16x128xf32>
      %c2_18 = arith.constant 2 : index
      %c0_19 = arith.constant 0 : index
      %c0_20 = arith.constant 0 : index
      %26 = vector.load %arg4[%c2_18, %c0_19, %c0_20] : memref<3x72x128xf32, #tpu.memory_space<vmem>>, vector<1x72x128xf32>
      %27 = vector.shape_cast %26 : vector<1x72x128xf32> to vector<72x128xf32>
      %cst_21 = arith.constant dense<0.000000e+00> : vector<16x128xf32>
      %28 = tpu.matmul %18, %27, %cst_21 {dimension_numbers = #tpu.dot_dimension_numbers<[1], [0], [0], [1], [0, 0, 1, 1], [], []>} : vector<16x72xf32>, vector<72x128xf32>, vector<16x128xf32> -> vector<16x128xf32>
      %29 = arith.addf %25, %28 : vector<16x128xf32>
      %c0_22 = arith.constant 0 : index
      %c0_23 = arith.constant 0 : index
      %30 = vector.load %arg5[%c0_22, %c0_23] : memref<1x128xf32, #tpu.memory_space<vmem>>, vector<1x128xf32>
      %31 = vector.broadcast %30 : vector<1x128xf32> to vector<16x128xf32>
      %32 = arith.addf %29, %31 : vector<16x128xf32>
      %33 = arith.index_cast %1 : i32 to index
      %c0_24 = arith.constant 0 : index
      %34 = vector.load %arg10[%33, %c0_24] : memref<32x128xf32, #tpu.memory_space<vmem>>, vector<16x128xf32>
      tpu.vector_store %arg10[%33, %c0_24], %32 {strides = array<i32>} : memref<32x128xf32, #tpu.memory_space<vmem>>, vector<16x128xf32>,
      %cst_25 = arith.constant dense<0.000000e+00> : vector<128xf32>
      %35 = vector.multi_reduction <add>, %32, %cst_25 [0] : vector<16x128xf32> to vector<128xf32>
      %36 = vector.shape_cast %35 : vector<128xf32> to vector<1x128xf32>
      %37 = arith.mulf %32, %32 : vector<16x128xf32>
      %cst_26 = arith.constant dense<0.000000e+00> : vector<128xf32>
      %38 = vector.multi_reduction <add>, %37, %cst_26 [0] : vector<16x128xf32> to vector<128xf32>
      %39 = vector.shape_cast %38 : vector<128xf32> to vector<1x128xf32>
      %c0_27 = arith.constant 0 : index
      %c0_28 = arith.constant 0 : index
      %40 = vector.load %arg11[%c0_27, %c0_28] : memref<2x128xf32, #tpu.memory_space<vmem>>, vector<2x128xf32>
      %41 = tpu.concatenate %36, %39 in 0 : vector<1x128xf32>, vector<1x128xf32> -> vector<2x128xf32>
      %42 = arith.addf %40, %41 : vector<2x128xf32>
      %c0_29 = arith.constant 0 : index
      %c0_30 = arith.constant 0 : index
      %43 = vector.load %arg11[%c0_29, %c0_30] : memref<2x128xf32, #tpu.memory_space<vmem>>, vector<2x128xf32>
      tpu.vector_store %arg11[%c0_29, %c0_30], %42 {strides = array<i32>} : memref<2x128xf32, #tpu.memory_space<vmem>>, vector<2x128xf32>,
    } else {
    }
    %c1_i32 = arith.constant 1 : i32
    %5 = arith.cmpi eq, %arg0, %c1_i32 : i32
    %6 = arith.extui %5 : i1 to i32
    %c0_i32_1 = arith.constant 0 : i32
    %7 = arith.cmpi ne, %6, %c0_i32_1 : i32
    scf.if %7 {
      %c0_i32_2 = arith.constant 0 : i32
      %8 = arith.cmpi eq, %arg1, %c0_i32_2 : i32
      %c0_i32_3 = arith.constant 0 : i32
      %9 = arith.cmpi eq, %arg2, %c0_i32_3 : i32
      %10 = arith.andi %8, %9 : i1
      %11 = arith.extui %10 : i1 to i32
      %c0_i32_4 = arith.constant 0 : i32
      %12 = arith.cmpi ne, %11, %c0_i32_4 : i32
      scf.if %12 {
        %c0_10 = arith.constant 0 : index
        %c0_11 = arith.constant 0 : index
        %24 = vector.load %arg11[%c0_10, %c0_11] : memref<2x128xf32, #tpu.memory_space<vmem>>, vector<2x128xf32>
        %c0_12 = arith.constant 0 : index
        %c0_13 = arith.constant 0 : index
        %25 = vector.load %arg8[%c0_12, %c0_13] : memref<128x128xf32, #tpu.memory_space<vmem>>, vector<128x128xf32>
        %cst_14 = arith.constant dense<0.000000e+00> : vector<2x128xf32>
        %26 = tpu.matmul %24, %25, %cst_14 {dimension_numbers = #tpu.dot_dimension_numbers<[1], [0], [0], [1], [0, 0, 1, 1], [], []>} : vector<2x128xf32>, vector<128x128xf32>, vector<2x128xf32> -> vector<2x128xf32>
        %27 = vector.extract_strided_slice %26 {offsets = [0, 0], sizes = [1, 128], strides = [1, 1]} : vector<2x128xf32> to vector<1x128xf32>
        %cst_15 = arith.constant 0.001953125 : f32
        %28 = vector.broadcast %cst_15 : f32 to vector<1x128xf32>
        %29 = arith.mulf %27, %28 : vector<1x128xf32>
        %30 = vector.extract_strided_slice %26 {offsets = [1, 0], sizes = [1, 128], strides = [1, 1]} : vector<2x128xf32> to vector<1x128xf32>
        %cst_16 = arith.constant 0.001953125 : f32
        %31 = vector.broadcast %cst_16 : f32 to vector<1x128xf32>
        %32 = arith.mulf %30, %31 : vector<1x128xf32>
        %33 = arith.mulf %29, %29 : vector<1x128xf32>
        %34 = arith.subf %32, %33 : vector<1x128xf32>
        %cst_17 = arith.constant 9.99999974E-6 : f32
        %35 = vector.broadcast %cst_17 : f32 to vector<1x128xf32>
        %36 = arith.addf %34, %35 : vector<1x128xf32>
        %37 = math.rsqrt %36 : vector<1x128xf32>
        %c0_18 = arith.constant 0 : index
        %c0_19 = arith.constant 0 : index
        %38 = vector.load %arg6[%c0_18, %c0_19] : memref<1x128xf32, #tpu.memory_space<vmem>>, vector<1x128xf32>
        %39 = arith.mulf %38, %37 : vector<1x128xf32>
        %c0_20 = arith.constant 0 : index
        %c0_21 = arith.constant 0 : index
        %40 = vector.load %arg7[%c0_20, %c0_21] : memref<1x128xf32, #tpu.memory_space<vmem>>, vector<1x128xf32>
        %41 = arith.mulf %29, %39 : vector<1x128xf32>
        %42 = arith.subf %40, %41 : vector<1x128xf32>
        %43 = tpu.concatenate %39, %42 in 0 : vector<1x128xf32>, vector<1x128xf32> -> vector<2x128xf32>
        %c0_22 = arith.constant 0 : index
        %c0_23 = arith.constant 0 : index
        %44 = vector.load %arg12[%c0_22, %c0_23] : memref<2x128xf32, #tpu.memory_space<vmem>>, vector<2x128xf32>
        tpu.vector_store %arg12[%c0_22, %c0_23], %43 {strides = array<i32>} : memref<2x128xf32, #tpu.memory_space<vmem>>, vector<2x128xf32>,
      } else {
      }
      %13 = arith.index_cast %1 : i32 to index
      %c0 = arith.constant 0 : index
      %14 = vector.load %arg10[%13, %c0] : memref<32x128xf32, #tpu.memory_space<vmem>>, vector<16x128xf32>
      %c0_5 = arith.constant 0 : index
      %c0_6 = arith.constant 0 : index
      %15 = vector.load %arg12[%c0_5, %c0_6] : memref<2x128xf32, #tpu.memory_space<vmem>>, vector<1x128xf32>
      %16 = vector.broadcast %15 : vector<1x128xf32> to vector<16x128xf32>
      %17 = arith.mulf %14, %16 : vector<16x128xf32>
      %c1 = arith.constant 1 : index
      %c0_7 = arith.constant 0 : index
      %18 = vector.load %arg12[%c1, %c0_7] : memref<2x128xf32, #tpu.memory_space<vmem>>, vector<1x128xf32>
      %19 = vector.broadcast %18 : vector<1x128xf32> to vector<16x128xf32>
      %20 = arith.addf %17, %19 : vector<16x128xf32>
      %cst = arith.constant 0.000000e+00 : f32
      %21 = vector.broadcast %cst : f32 to vector<16x128xf32>
      %22 = arith.maximumf %20, %21 : vector<16x128xf32>
      %c0_8 = arith.constant 0 : index
      %c0_9 = arith.constant 0 : index
      %23 = vector.load %arg9[%c0_8, %c0_9] : memref<16x128xf32, #tpu.memory_space<vmem>>, vector<16x128xf32>
      tpu.vector_store %arg9[%c0_8, %c0_9], %22 {strides = array<i32>} : memref<16x128xf32, #tpu.memory_space<vmem>>, vector<16x128xf32>,
    } else {
    }
    return
  }
  func.func @transform_0(%arg0: i32, %arg1: i32, %arg2: i32) -> (i32, i32, i32) {
    %c1_i32 = arith.constant 1 : i32
    %0 = arith.subi %c1_i32, %arg0 : i32
    %1 = arith.muli %0, %arg1 : i32
    %c0_i32 = arith.constant 0 : i32
    %c0_i32_0 = arith.constant 0 : i32
    %c0_i32_1 = arith.constant 0 : i32
    return %1, %c0_i32, %c0_i32_0 : i32, i32, i32
  }
  func.func @transform_1(%arg0: i32, %arg1: i32, %arg2: i32) -> (i32, i32, i32) {
    %c0_i32 = arith.constant 0 : i32
    %c0_i32_0 = arith.constant 0 : i32
    %c0_i32_1 = arith.constant 0 : i32
    %c0_i32_2 = arith.constant 0 : i32
    return %c0_i32, %c0_i32_0, %c0_i32_1 : i32, i32, i32
  }
  func.func @transform_2(%arg0: i32, %arg1: i32, %arg2: i32) -> (i32, i32) {
    %c0_i32 = arith.constant 0 : i32
    %c0_i32_0 = arith.constant 0 : i32
    %c0_i32_1 = arith.constant 0 : i32
    return %c0_i32, %c0_i32_0 : i32, i32
  }
  func.func @transform_3(%arg0: i32, %arg1: i32, %arg2: i32) -> (i32, i32) {
    %c0_i32 = arith.constant 0 : i32
    %c0_i32_0 = arith.constant 0 : i32
    %c0_i32_1 = arith.constant 0 : i32
    return %c0_i32, %c0_i32_0 : i32, i32
  }
  func.func @transform_4(%arg0: i32, %arg1: i32, %arg2: i32) -> (i32, i32) {
    %c0_i32 = arith.constant 0 : i32
    %c0_i32_0 = arith.constant 0 : i32
    %c0_i32_1 = arith.constant 0 : i32
    return %c0_i32, %c0_i32_0 : i32, i32
  }
  func.func @transform_5(%arg0: i32, %arg1: i32, %arg2: i32) -> (i32, i32) {
    %c0_i32 = arith.constant 0 : i32
    %c0_i32_0 = arith.constant 0 : i32
    %c0_i32_1 = arith.constant 0 : i32
    return %c0_i32, %c0_i32_0 : i32, i32
  }
  func.func @transform_6(%arg0: i32, %arg1: i32, %arg2: i32) -> (i32, i32) {
    %c1_i32 = arith.constant 1 : i32
    %0 = arith.muli %arg1, %c1_i32 : i32
    %1 = arith.addi %0, %arg2 : i32
    %2 = arith.muli %arg0, %1 : i32
    %c0_i32 = arith.constant 0 : i32
    %c0_i32_0 = arith.constant 0 : i32
    return %2, %c0_i32 : i32, i32
  }
}

</mosaic_0001>

<bundles_post_ra>
// kernel: tile.18
= control target key start
LH: loop header
LB: loop body
LE: loop exit
PB: predicated region body
PF: predicated region fallthrough
CT: control target
= control target key end

     0   :  { %s28_s0 = inlined_call_operand.vmem [shape: f32[8], index: 0, kind: input, shape index: {}]   ;;  %s29_s1 = inlined_call_operand.vmem [shape: f32[16,8], index: 1, kind: output, shape index: {}]  }
   0x1   :  { %v4_v0 = vld [vmem:[%s28_s0] ss:$0 sm:$0xff] }
   0x2   :  { %5 = vst [vmem:[%s29_s1] sm:$0xff] %v4_v0  ;;  %8 = vst [vmem:[%s29_s1 + $0x8] sm:$0xff] %v4_v0 }

// kernel: tile.19
= control target key start
LH: loop header
LB: loop body
LE: loop exit
PB: predicated region body
PF: predicated region fallthrough
CT: control target
= control target key end

     0   :  { %s133_s10 = smov 120   ;;  %s134_s11 = smov 104   ;;  %vm3_vm0 = vcmask 64512   ;;  %vm9_vm1 = vcmask 1048512   ;;  %vm15_vm2 = vcmask 982912   ;;  %vm21_vm3 = vcmask 917312   ;;  %s209_s0 = inlined_call_operand.vmem [shape: f32[16,8], index: 0, kind: input, shape index: {}]   ;;  %s210_s1 = inlined_call_operand.vmem [shape: f32[1,128], index: 1, kind: output, shape index: {}]  }
   0x1   :  { %v103_v0 = vld [vmem:[%s209_s0 + $0xf] sm:$0x1]   ;;  %v105_v1 = vld [vmem:[%s209_s0 + $0xd] sm:$0x1]   ;;  %v104_v2 = vld [vmem:[%s209_s0 + $0xe] sm:$0x1]  }
   0x2   :  { %7 = vrot.lane.b32.xlu0 %v103_v0, %s133_s10  ;;  %19 = vrot.lane.b32.xlu1 %v105_v1, %s134_s11  ;;  %v106_v3 = vld [vmem:[%s209_s0 + $0xc] sm:$0x1]   ;;  %s135_s16 = smov 112   ;;  %s136_s17 = smov 96   ;;  %v107_v4 = vld [vmem:[%s209_s0 + $0xb] sm:$0x1]  }
   0x3   :  { %v108_v5 = vld [vmem:[%s209_s0 + $0xa] sm:$0x1]   ;;  %v2_v6 = vld [vmem:[%s209_s0] sm:$0x1]   ;;  %s137_s24 = smov 88   ;;  %s138_s25 = smov 80  }
   0x4   :  { %4 = vst.msk [vmem:[#allocation0] sm:$0x1] %vm3_vm0, %v2_v6   ;;  %v109_v7 = vld [vmem:[%s209_s0 + $0x9] sm:$0x1]   ;;  %v110_v8 = vld [vmem:[%s209_s0 + $0x8] sm:$0x1]  }
   0x5   :  { %s139_s30 = smov 72   ;;  %s140_s2 = smov 64   ;;  %v111_v9 = vld [vmem:[%s209_s0 + $0x7] sm:$0x1]   ;;  %v112_v10 = vld [vmem:[%s209_s0 + $0x6] sm:$0x1]  }
   0x6   :  { %13 = vrot.lane.b32.xlu0 %v104_v2, %s135_s16  ;;  %25 = vrot.lane.b32.xlu1 %v106_v3, %s136_s17  ;;  %s141_s7 = smov 56   ;;  %s142_s8 = smov 48   ;;  %v113_v11 = vld [vmem:[%s209_s0 + $0x5] sm:$0x1]   ;;  %v114_v12 = vld [vmem:[%s209_s0 + $0x4] sm:$0x1]  }
   0x7   :  { %s143_s13 = smov 40   ;;  %s144_s14 = smov 32   ;;  %v115_v13 = vld [vmem:[%s209_s0 + $0x3] sm:$0x1]   ;;  %v116_v14 = vld [vmem:[%s209_s0 + $0x2] sm:$0x1]  }
   0x8   :  { %s145_s19 = smov 24   ;;  %s146_s20 = smov 16   ;;  %v117_v15 = vld [vmem:[%s209_s0 + $0x1] sm:$0x1]   ;;  %vm27_vm4 = vcmask 851712   ;;  %vm33_vm5 = vcmask 786112  }
   0x9   :  { %s147_s0 = smov 8   ;;  %vm39_vm6 = vcmask 720512   ;;  %vm45_vm7 = vcmask 654912   ;;  %vm51_vm8 = vcmask 589312   ;;  %vm57_vm9 = vcmask 523712  }
   0xa   :  { %31 = vrot.lane.b32.xlu0 %v107_v4, %s137_s24  ;;  %37 = vrot.lane.b32.xlu1 %v108_v5, %s138_s25  ;;  %vm63_vm10 = vcmask 458112   ;;  %vm69_vm11 = vcmask 392512   ;;  %vm75_vm12 = vcmask 326912   ;;  %vm81_vm13 = vcmask 261312  }
   0xb   :  { %vm87_vm14 = vcmask 195712   ;;  %vm93_vm15 = vcmask 130112  }
   0xe   :  { %43 = vrot.lane.b32.xlu0 %v109_v7, %s139_s30  ;;  %49 = vrot.lane.b32.xlu1 %v110_v8, %s140_s2 }
  0x12   :  { %55 = vrot.lane.b32.xlu0 %v111_v9, %s141_s7  ;;  %61 = vrot.lane.b32.xlu1 %v112_v10, %s142_s8 }
  0x16   :  { %67 = vrot.lane.b32.xlu0 %v113_v11, %s143_s13  ;;  %73 = vrot.lane.b32.xlu1 %v114_v12, %s144_s14 }
  0x1a   :  { %79 = vrot.lane.b32.xlu0 %v115_v13, %s145_s19  ;;  %85 = vrot.lane.b32.xlu1 %v116_v14, %s146_s20 }
  0x1e   :  { %91 = vrot.lane.b32.xlu0 %v117_v15, %s147_s0 }
  0x74   :  { %v8_v16 = vpop.permute.xlu0 %7   ;;  %v20_v17 = vpop.permute.xlu1 %19  }
  0x75   :  { %10 = vst.msk [vmem:[#allocation0] sm:$0x1] %vm9_vm1, %v8_v16  }
  0x78   :  { %v14_v18 = vpop.permute.xlu0 %13   ;;  %v26_v19 = vpop.permute.xlu1 %25  }
  0x79   :  { %16 = vst.msk [vmem:[#allocation0] sm:$0x1] %vm15_vm2, %v14_v18  }
  0x7a   :  { %22 = vst.msk [vmem:[#allocation0] sm:$0x1] %vm21_vm3, %v20_v17  }
  0x7b   :  { %28 = vst.msk [vmem:[#allocation0] sm:$0x1] %vm27_vm4, %v26_v19  }
  0x7c   :  { %v32_v20 = vpop.permute.xlu0 %31   ;;  %v38_v21 = vpop.permute.xlu1 %37  }
  0x7d   :  { %34 = vst.msk [vmem:[#allocation0] sm:$0x1] %vm33_vm5, %v32_v20  }
  0x7e   :  { %40 = vst.msk [vmem:[#allocation0] sm:$0x1] %vm39_vm6, %v38_v21  }
  0x80   :  { %v44_v22 = vpop.permute.xlu0 %43   ;;  %v50_v23 = vpop.permute.xlu1 %49  }
  0x81   :  { %46 = vst.msk [vmem:[#allocation0] sm:$0x1] %vm45_vm7, %v44_v22  }
  0x82   :  { %52 = vst.msk [vmem:[#allocation0] sm:$0x1] %vm51_vm8, %v50_v23  }
  0x84   :  { %v56_v24 = vpop.permute.xlu0 %55   ;;  %v62_v25 = vpop.permute.xlu1 %61  }
  0x85   :  { %58 = vst.msk [vmem:[#allocation0] sm:$0x1] %vm57_vm9, %v56_v24  }
  0x86   :  { %64 = vst.msk [vmem:[#allocation0] sm:$0x1] %vm63_vm10, %v62_v25  }
  0x88   :  { %v68_v26 = vpop.permute.xlu0 %67   ;;  %v74_v27 = vpop.permute.xlu1 %73  }
  0x89   :  { %70 = vst.msk [vmem:[#allocation0] sm:$0x1] %vm69_vm11, %v68_v26  }
  0x8a   :  { %76 = vst.msk [vmem:[#allocation0] sm:$0x1] %vm75_vm12, %v74_v27  }
  0x8c   :  { %v80_v28 = vpop.permute.xlu0 %79   ;;  %v86_v29 = vpop.permute.xlu1 %85  }
  0x8d   :  { %82 = vst.msk [vmem:[#allocation0] sm:$0x1] %vm81_vm13, %v80_v28  }
  0x8e   :  { %88 = vst.msk [vmem:[#allocation0] sm:$0x1] %vm87_vm14, %v86_v29  }
  0x90   :  { %v92_v30 = vpop.permute.xlu0 %91  }
  0x91   :  { %94 = vst.msk [vmem:[#allocation0] sm:$0x1] %vm93_vm15, %v92_v30  }
  0x98   :  { %v99_v31 = vld [vmem:[#allocation0] sm:$0x1] }
  0x99   :  { %102 = vst [vmem:[%s210_s1] sm:$0x1] %v99_v31 }

// kernel: up_forward.1
= control target key start
LH: loop header
LB: loop body
LE: loop exit
PB: predicated region body
PF: predicated region fallthrough
CT: control target
= control target key end

     0   :  { %s1178_s21 = smov 0   ;;  %s1180_s22 = smov 0   ;;  %s1402_s0 = inlined_call_operand.vmem [shape: f32[2,18,72], index: 0, kind: input, shape index: {}]   ;;  %s1403_s1 = inlined_call_operand.vmem [shape: f32[3,72,128], index: 1, kind: input, shape index: {}]   ;;  %s1404_s2 = inlined_call_operand.vmem [shape: f32[1,128], index: 2, kind: input, shape index: {}]   ;;  %s1405_s3 = inlined_call_operand.vmem [shape: f32[1,128], index: 3, kind: input, shape index: {}]   ;;  %s1406_s4 = inlined_call_operand.vmem [shape: f32[1,128], index: 4, kind: input, shape index: {}]   ;;  %s1407_s5 = inlined_call_operand.vmem [shape: f32[128,128], index: 5, kind: input, shape index: {}]   ;;  %s1408_s6 = inlined_call_operand.vmem [shape: f32[32,128], index: 6, kind: output, shape index: {}]  }
   0x1   :  { %s1182_s23 = smov 0   ;;  %s1184_s24 = smov 0  }
   0x2   :  { %s1186_s25 = smov 0  }
   0x3 LB: > { %s31_s26 = sadd.s32 1, %s1129_s23  ;;  %s35_s27 = sadd.s32 1, %s1133_s24  ;;  %s1137_s25 = sphi %s1186_s25, %s16_s25   ;;  %s1133_s24 = sphi %s1184_s24, %s1412_s24   ;;  %s1129_s23 = sphi %s1182_s23, %s1411_s23   ;;  %s1125_s22 = sphi %s1180_s22, %s1410_s22   ;;  %s1121_s21 = sphi %s1178_s21, %s1409_s21  }
   0x4   : > { %p33_p0 = scmp.ge.s32.totalorder %s31_s26, 2  ;;  %p864_p1 = scmp.ge.s32.totalorder %s1137_s25, 1 }
   0x5   : > { %p243_p2 = scmp.lt.s32.totalorder %s1137_s25, 5 }
   0x6   : > { %s1414_s26 = smov (%p33_p0, %s31_s26), 0  ;;  %s1416_s27 = smov (!%p33_p0, %s35_s27), %s1133_s24 }
   0x7   : > { %p244_p3 = pnand %p864_p1, %p243_p2  ;;  %p37_p4 = scmp.ge.s32.totalorder %s1416_s27, 2 }
   0x8   : > { %s277_s28 = ssub.s32 (!%p244_p3), 1, %s1125_s22  ;;  %s287_s29 = smul.u32 (!%p244_p3), %s1121_s21, %s1125_s22 }
   0x9   : > { %s1418_s27 = smov (%p37_p4, %s1416_s27), 0  ;;  %247 = sbr.rel (%p244_p3) target bundleno = 571 (0x23b), region = 44 }
   0xa   : > { %s278_s30 = smul.u32 (!%p244_p3), %s1121_s21, %s277_s28  ;;  %s868_s7 = sshll.u32 (!%p244_p3), %s1121_s21, 4 }
   0xb   : > { %s866_s8 = sshll.u32 (!%p244_p3), %s287_s29, 1  ;;  %p869_p7 = scmp.ne.s32.totalorder (!%p244_p3), %s1125_s22, 0 }
   0xc   : > { %p279_p5 = scmp.lt.s32.totalorder (!%p244_p3), %s278_s30, 1  ;;  %p289_p6 = scmp.lt.s32.totalorder (!%p244_p3), %s866_s8, 3 }
   0xe   : > { %s1420_s30 = smov (!%p279_p5, %s278_s30), 1  ;;  %s1422_s8 = smov (!%p289_p6, %s866_s8), 3 }
   0xf   : > { %s1052_s9 = smul.u32 24, %s1420_s30  ;;  %s867_s10 = sshll.u32 %s1422_s8, 3 }
  0x10   : > { %s1225_s16 = scalar_lea.vmem %s1408_s6, %s867_s10  ;;  %300 = sbr.rel (%p869_p7) target bundleno = 284 (0x11c), region = 48 }
  0x11   : > { %s1220_s13 = scalar_lea.vmem %s1402_s0, %s1052_s9  ;;  %p301_p8 = scmp.eq.s32.totalorder (!%p869_p7), %s1121_s21, 0 }
  0x15   : > { %306 = sbr.rel (!%p301_p8) target bundleno = 26 (0x1a), region = 52  ;;  %v1139_v0 = vmov (%p301_p8), 0.0  }
  0x16   : > { %307 = vst [vmem:[#allocation3] sm:$0x3] (%p301_p8), %v1139_v0 }
  0x1a PF: > { %v879_v1 = vld [vmem:[%s1403_s1 + $0x88] sm:$0xff]  ;;  %v322_v2 = vld [vmem:[%s1403_s1 + $0x40] sm:$0xff]  ;;  %v321_v4 = vld [vmem:[%s1403_s1 + $0x38] sm:$0xff]  ;;  %vm333_vm0 = vcmask 588800   ;;  %vm618_vm1 = vcmask 1040384  }
  0x1b   : > { %v878_v3 = vld [vmem:[%s1403_s1 + $0x80] sm:$0xff]  ;;  %954 = vmatprep.subr.mxu0 %v879_v1  ;;  %975 = vmatprep.subr.mxu1 %v322_v2  ;;  %v877_v5 = vld [vmem:[%s1403_s1 + $0x78] sm:$0xff]  ;;  %v320_v6 = vld [vmem:[%s1403_s1 + $0x30] sm:$0xff] }
  0x1c   : > { %955 = vmatpush3.msra.mxu0 %v879_v1  ;;  %976 = vmatpush3.msra.mxu1 %v322_v2  ;;  %v876_v7 = vld [vmem:[%s1403_s1 + $0x70] sm:$0xff]  ;;  %v319_v8 = vld [vmem:[%s1403_s1 + $0x28] sm:$0xff]  ;;  %v318_v10 = vld [vmem:[%s1403_s1 + $0x20] sm:$0xff] }
  0x1d   : > { %956 = vmatprep.subr.mxu0 %v878_v3  ;;  %977 = vmatprep.subr.mxu1 %v321_v4  ;;  %v875_v9 = vld [vmem:[%s1403_s1 + $0x68] sm:$0xff]  ;;  %v874_v11 = vld [vmem:[%s1403_s1 + $0x60] sm:$0xff]  ;;  %v317_v12 = vld [vmem:[%s1403_s1 + $0x18] sm:$0xff] }
  0x1e   : > { %957 = vmatpush3.msra.mxu0 %v878_v3  ;;  %978 = vmatpush3.msra.mxu1 %v321_v4  ;;  %v873_v13 = vld [vmem:[%s1403_s1 + $0x58] sm:$0xff]  ;;  %v316_v14 = vld [vmem:[%s1403_s1 + $0x10] sm:$0xff]  ;;  %v315_v16 = vld [vmem:[%s1403_s1 + $0x8] sm:$0xff] }
  0x1f   : > { %958 = vmatprep.subr.mxu0 %v877_v5  ;;  %979 = vmatprep.subr.mxu1 %v320_v6  ;;  %v872_v15 = vld [vmem:[%s1403_s1 + $0x50] sm:$0xff]  ;;  %v871_v17 = vld [vmem:[%s1403_s1 + $0x48] sm:$0xff]  ;;  %v314_v18 = vld [vmem:[%s1403_s1] sm:$0xff] }
  0x20   : > { %959 = vmatpush3.msra.mxu0 %v877_v5  ;;  %980 = vmatpush3.msra.mxu1 %v320_v6  ;;  %v310_v19 = vld [vmem:[%s1220_s13 + $0x1] sm:$0xff]  ;;  %v311_v21 = vld [vmem:[%s1220_s13 + $0x9] sm:$0xff]  ;;  %v889_v27 = vld [vmem:[%s1403_s1 + $0xb8] sm:$0xff] }
  0x21   : > { %960 = vmatprep.subr.mxu0 %v876_v7  ;;  %981 = vmatprep.subr.mxu1 %v319_v8  ;;  %v308_v20 = vld [vmem:[%s1220_s13] sm:$0xff]  ;;  %v309_v22 = vld [vmem:[%s1220_s13 + $0x8] sm:$0xff]  ;;  %v892_v23 = vld [vmem:[%s1403_s1 + $0xd0] sm:$0xff] }
  0x22   : > { %961 = vmatpush3.msra.mxu0 %v876_v7  ;;  %982 = vmatpush3.msra.mxu1 %v319_v8  ;;  %v312_v24 = vld [vmem:[%s1220_s13 + $0x2] sm:$0xff]  ;;  %v888_v28 = vld [vmem:[%s1403_s1 + $0xb0] sm:$0xff]  ;;  %v885_v31 = vld [vmem:[%s1403_s1 + $0x98] sm:$0xff] }
  0x23   : > { %962 = vmatprep.subr.mxu0 %v875_v9  ;;  %983 = vmatprep.subr.mxu1 %v318_v10  ;;  %v891_v25 = vld [vmem:[%s1403_s1 + $0xc8] sm:$0xff]  ;;  %v890_v26 = vld [vmem:[%s1403_s1 + $0xc0] sm:$0xff]  ;;  %v884_v32 = vld [vmem:[%s1403_s1 + $0x90] sm:$0xff] }
  0x24   : > { %963 = vmatpush3.msra.mxu0 %v875_v9  ;;  %984 = vmatpush3.msra.mxu1 %v318_v10  ;;  %v887_v29 = vld [vmem:[%s1403_s1 + $0xa8] sm:$0xff]  ;;  %v886_v30 = vld [vmem:[%s1403_s1 + $0xa0] sm:$0xff] }
  0x25   : > { %964 = vmatprep.subr.mxu0 %v874_v11  ;;  %985 = vmatprep.subr.mxu1 %v317_v12  ;;  %v313_v33 = vld [vmem:[%s1220_s13 + $0xa] sm:$0xff]  ;;  %v895_v40 = vld [vmem:[%s1404_s2] ss:$0 sm:$0xff]  ;;  %s598_s13 = scalar_lea.vmem [#allocation2], %s868_s7 }
  0x26   : > { %965 = vmatpush3.msra.mxu0 %v874_v11  ;;  %986 = vmatpush3.msra.mxu1 %v317_v12  ;;  %v617_v63 = vld [vmem:[#allocation3] sm:$0x3] }
  0x27   : > { %966 = vmatprep.subr.mxu0 %v873_v13  ;;  %987 = vmatprep.subr.mxu1 %v316_v14 }
  0x28   : > { %967 = vmatpush3.msra.mxu0 %v873_v13  ;;  %988 = vmatpush3.msra.mxu1 %v316_v14 }
  0x29   : > { %968 = vmatprep.subr.mxu0 %v872_v15  ;;  %989 = vmatprep.subr.mxu1 %v315_v16 }
  0x2a   : > { %969 = vmatpush3.msra.mxu0 %v872_v15  ;;  %990 = vmatpush3.msra.mxu1 %v315_v16 }
  0x2b   : > { %970 = vmatprep.subr.mxu0 %v871_v17  ;;  %991 = vmatprep.subr.mxu1 %v314_v18 }
  0x2c   : > { %971 = vmatpush3.msra.mxu0 %v871_v17  ;;  %972 = vmatprep.mubr.msk.f32.mxu0 %vm333_vm0, %v310_v19 }
  0x2d   : > { %992 = vmatpush3.msra.mxu1 %v314_v18  ;;  %993 = vmatprep.mubr.msk.f32.mxu1 %vm333_vm0, %v308_v20 }
  0x2e   : > { %973 = vmatmul.mubr.msk.f32.vlgmr.msra.gmra.mxu0 %vm333_vm0, %v311_v21  ;;  %994 = vmatmul.mubr.msk.f32.vlgmr.msra.gmra.mxu1 %vm333_vm0, %v309_v22 }
  0x2f   : > { %996 = vmatprep.subr.mxu0 %v892_v23  ;;  %1014 = vmatprep.mubr.msk.f32.mxu0 %vm333_vm0, %v312_v24 }
  0x30   : > { %997 = vmatpush3.msra.mxu0 %v892_v23 }
  0x31   : > { %998 = vmatprep.subr.mxu0 %v891_v25 }
  0x32   : > { %999 = vmatpush3.msra.mxu0 %v891_v25 }
  0x33   : > { %1000 = vmatprep.subr.mxu0 %v890_v26 }
  0x34   : > { %1001 = vmatpush3.msra.mxu0 %v890_v26 }
  0x35   : > { %1002 = vmatprep.subr.mxu0 %v889_v27 }
  0x36   : > { %1003 = vmatpush3.msra.mxu0 %v889_v27 }
  0x37   : > { %1004 = vmatprep.subr.mxu0 %v888_v28 }
  0x38   : > { %1005 = vmatpush3.msra.mxu0 %v888_v28 }
  0x39   : > { %1006 = vmatprep.subr.mxu0 %v887_v29 }
  0x3a   : > { %1007 = vmatpush3.msra.mxu0 %v887_v29 }
  0x3b   : > { %1008 = vmatprep.subr.mxu0 %v886_v30 }
  0x3c   : > { %1009 = vmatpush3.msra.mxu0 %v886_v30 }
  0x3d   : > { %1010 = vmatprep.subr.mxu0 %v885_v31 }
  0x3e   : > { %1011 = vmatpush3.msra.mxu0 %v885_v31 }
  0x3f   : > { %1012 = vmatprep.subr.mxu0 %v884_v32 }
  0x40   : > { %1013 = vmatpush3.msra.mxu0 %v884_v32 }
  0x41   : > { %1015 = vmatmul.mubr.msk.f32.vlgmr.msra.gmra.mxu0 %vm333_vm0, %v313_v33 }
  0xee   : > { %v974_v34 = vpop.f32.mrf.mxu0  ;;  %v995_v35 = vpop.f32.mrf.mxu1 }
  0xef   : > { %v493_v38 = vadd.f32 %v995_v35, %v974_v34 }
  0xf0   : > { %v406_v36 = vpop.f32.mrf.mxu0  ;;  %v487_v37 = vpop.f32.mrf.mxu1 }
  0xf1   : > { %v488_v41 = vadd.f32 %v487_v37, %v406_v36 }
 0x101   : > { %v1016_v39 = vpop.f32.mrf.mxu0 }
 0x102   : > { %v588_v42 = vadd.f32 %v1016_v39, %v493_v38 }
 0x103   : > { %v578_v43 = vpop.f32.mrf.mxu0 }
 0x104   : > { %v597_v44 = vadd.f32 %v895_v40, %v588_v42  ;;  %v587_v45 = vadd.f32 %v578_v43, %v488_v41 }
 0x106   : > { %600 = vst [vmem:[%s598_s13 + $0x8] sm:$0xff] %v597_v44  ;;  %v596_v46 = vadd.f32 %v895_v40, %v587_v45  ;;  %v609_v47 = vmul.f32 %v597_v44, %v597_v44 }
 0x108   : > { %599 = vst [vmem:[%s598_s13] sm:$0xff] %v596_v46  ;;  %v601_v48 = vadd.f32 %v597_v44, %v596_v46  ;;  %v608_v49 = vmul.f32 %v596_v46, %v596_v46 }
 0x10a   : > { %v602_v50 = vrot.slane %v601_v48, 4  ;;  %v610_v51 = vadd.f32 %v609_v47, %v608_v49 }
 0x10c   : > { %v603_v52 = vadd.f32 %v602_v50, %v601_v48  ;;  %v611_v53 = vrot.slane %v610_v51, 4 }
 0x10e   : > { %v604_v54 = vrot.slane %v603_v52, 2  ;;  %v612_v55 = vadd.f32 %v611_v53, %v610_v51 }
 0x110   : > { %v605_v56 = vadd.f32 %v604_v54, %v603_v52  ;;  %v613_v57 = vrot.slane %v612_v55, 2 }
 0x112   : > { %v606_v58 = vrot.slane %v605_v56, 1  ;;  %v614_v59 = vadd.f32 %v613_v57, %v612_v55 }
 0x114   : > { %v615_v60 = vrot.slane %v614_v59, 1  ;;  %v607_v61 = vadd.f32 %v606_v58, %v605_v56 }
 0x116   : > { %v616_v62 = vadd.f32 %v615_v60, %v614_v59 }
 0x118   : > { %v619_v0 = vsel %vm618_vm1, %v607_v61, %v616_v62 }
 0x119   : > { %v620_v1 = vadd.f32 %v619_v0, %v617_v63 }
 0x11b   : > { %621 = vst [vmem:[#allocation3] sm:$0x3] %v620_v1 }
 0x11c PF: > { %p896_p9 = scmp.ne.s32.totalorder %s1125_s22, 1 }
 0x11d   : > { %p626_p10 = scmp.eq.s32.totalorder (!%p896_p9), %s1121_s21, 0 }
 0x11e   : > { %625 = sbr.rel (%p896_p9) target bundleno = 571 (0x23b), region = 56 }
 0x123   : > { %631 = sbr.rel (!%p626_p10) target bundleno = 557 (0x22d), region = 60  ;;  %v648_v2 = vld [vmem:[%s1407_s5 + $0x78] sm:$0xff] (%p626_p10)  ;;  %v1140_v3 = vmov (%p626_p10), 0.0   ;;  %v647_v4 = vld [vmem:[%s1407_s5 + $0x70] sm:$0xff] (%p626_p10)  ;;  %vm1141_vm2 = vmmov (%p626_p10), 0   ;;  %v646_v5 = vld [vmem:[%s1407_s5 + $0x68] sm:$0xff] (%p626_p10)  ;;  %v732_v29 = vlaneseq (%p626_p10) }
 0x124   : > { %1017 = vmatprep.subr.mxu0 (%p626_p10), %v1140_v3  ;;  %1049 = vmatprep.mubr.msk.f32.mxu0 (%p626_p10), %vm1141_vm2, %v1140_v3  ;;  %v645_v6 = vld [vmem:[%s1407_s5 + $0x60] sm:$0xff] (%p626_p10)  ;;  %v644_v7 = vld [vmem:[%s1407_s5 + $0x58] sm:$0xff] (%p626_p10)  ;;  %v643_v8 = vld [vmem:[%s1407_s5 + $0x50] sm:$0xff] (%p626_p10)  ;;  %v1142_v27 = vmov (%p626_p10), 1966171168   ;;  %vm755_vm3 = vcmask (%p626_p10), 1040384  }
 0x125   : > { %1018 = vmatpush3.msra.mxu0 (%p626_p10), %v648_v2  ;;  %v642_v9 = vld [vmem:[%s1407_s5 + $0x48] sm:$0xff] (%p626_p10)  ;;  %v641_v10 = vld [vmem:[%s1407_s5 + $0x40] sm:$0xff] (%p626_p10)  ;;  %v640_v11 = vld [vmem:[%s1407_s5 + $0x38] sm:$0xff] (%p626_p10)  ;;  %v730_v28 = vunpack.c.l.s4 (%p626_p10), %v1142_v27  ;;  %v733_v31 = vshrl.u32 (%p626_p10), %v732_v29, 7 }
 0x126   : > { %1019 = vmatprep.subr.mxu0 (%p626_p10), %v1140_v3  ;;  %v639_v12 = vld [vmem:[%s1407_s5 + $0x30] sm:$0xff] (%p626_p10)  ;;  %v638_v13 = vld [vmem:[%s1407_s5 + $0x28] sm:$0xff] (%p626_p10)  ;;  %v637_v14 = vld [vmem:[%s1407_s5 + $0x20] sm:$0xff] (%p626_p10) }
 0x127   : > { %1020 = vmatpush3.msra.mxu0 (%p626_p10), %v647_v4  ;;  %v636_v15 = vld [vmem:[%s1407_s5 + $0x18] sm:$0xff] (%p626_p10)  ;;  %v635_v16 = vld [vmem:[%s1407_s5 + $0x10] sm:$0xff] (%p626_p10)  ;;  %v634_v17 = vld [vmem:[%s1407_s5 + $0x8] sm:$0xff] (%p626_p10)  ;;  %v731_v30 = vunpack.c.0.s8 (%p626_p10), %v730_v28  ;;  %v752_v41 = vsub.s32 (%p626_p10), 0, %v733_v31 }
 0x128   : > { %1021 = vmatprep.subr.mxu0 %v1140_v3  ;;  %v633_v18 = vld [vmem:[%s1407_s5] sm:$0xff] }
 0x129   : > { %1022 = vmatpush3.msra.mxu0 %v646_v5  ;;  %v632_v19 = vld [vmem:[#allocation3] sm:$0x3]  ;;  %v734_v32 = vsub.s32 %v731_v30, %v733_v31 }
 0x12a   : > { %1023 = vmatprep.subr.mxu0 %v1140_v3  ;;  %v727_v36 = vld [vmem:[%s1405_s3] sm:$0x1] }
 0x12b   : > { %1024 = vmatpush3.msra.mxu0 %v645_v6  ;;  %v746_v39 = vld [vmem:[%s1406_s4] sm:$0x1] }
 0x12c   : > { %1025 = vmatprep.subr.mxu0 %v1140_v3 }
 0x12d   : > { %1026 = vmatpush3.msra.mxu0 %v644_v7 }
 0x12e   : > { %1027 = vmatprep.subr.mxu0 %v1140_v3 }
 0x12f   : > { %1028 = vmatpush3.msra.mxu0 %v643_v8 }
 0x130   : > { %1029 = vmatprep.subr.mxu0 %v1140_v3 }
 0x131   : > { %1030 = vmatpush3.msra.mxu0 %v642_v9 }
 0x132   : > { %1031 = vmatprep.subr.mxu0 %v1140_v3 }
 0x133   : > { %1032 = vmatpush3.msra.mxu0 %v641_v10 }
 0x134   : > { %1033 = vmatprep.subr.mxu0 %v1140_v3 }
 0x135   : > { %1034 = vmatpush3.msra.mxu0 %v640_v11 }
 0x136   : > { %1035 = vmatprep.subr.mxu0 %v1140_v3 }
 0x137   : > { %1036 = vmatpush3.msra.mxu0 %v639_v12 }
 0x138   : > { %1037 = vmatprep.subr.mxu0 %v1140_v3 }
 0x139   : > { %1038 = vmatpush3.msra.mxu0 %v638_v13 }
 0x13a   : > { %1039 = vmatprep.subr.mxu0 %v1140_v3 }
 0x13b   : > { %1040 = vmatpush3.msra.mxu0 %v637_v14 }
 0x13c   : > { %1041 = vmatprep.subr.mxu0 %v1140_v3 }
 0x13d   : > { %1042 = vmatpush3.msra.mxu0 %v636_v15 }
 0x13e   : > { %1043 = vmatprep.subr.mxu0 %v1140_v3 }
 0x13f   : > { %1044 = vmatpush3.msra.mxu0 %v635_v16 }
 0x140   : > { %1045 = vmatprep.subr.mxu0 %v1140_v3 }
 0x141   : > { %1046 = vmatpush3.msra.mxu0 %v634_v17 }
 0x142   : > { %1047 = vmatprep.subr.mxu0 %v1140_v3 }
 0x143   : > { %1048 = vmatpush3.msra.mxu0 %v633_v18 }
 0x144   : > { %1050 = vmatmul.mubr.f32.vlgmr.msra.gmra.mxu0 %v632_v19 }
 0x204   : > { %v715_v20 = vpop.f32.mrf.mxu0 }
 0x205   : > { %v719_v21 = vmul.f32 0.001953125, %v715_v20 }
 0x206   : > { %v1051_v22 = vpop.f32.mrf.mxu0 }
 0x207   : > { %v720_v23 = vmul.f32 %v719_v21, %v719_v21 }
 0x209   : > { %v722_v24 = vrot.slane %v720_v23, 7 }
 0x20b   : > { %v724_v25 = vsub.f32 %v719_v21, %v722_v24 }
 0x20d   : > { %v725_v26 = vadd.f32 1e-05, %v724_v25 }
 0x20f   : > { %1097 = vrsqrt.f32 %v725_v26 }
 0x21c   : > { %v1098_v33 = vpop.eup %1097 }
 0x21d   : > { %v735_v34 = vrot.slane %v1098_v33, %v734_v32 }
 0x21f   : > { %v736_v35 = vcombine.high %v735_v34, %v735_v34 }
 0x221   : > { %v743_v37 = vrot.slane %v736_v35, %v734_v32 }
 0x223   : > { %v745_v38 = vmul.f32 %v743_v37, %v727_v36 }
 0x225   : > { %v747_v40 = vmul.f32 %v745_v38, %v719_v21 }
 0x227   : > { %v748_v42 = vsub.f32 %v746_v39, %v747_v40 }
 0x229   : > { %v753_v43 = vrot.slane %v748_v42, %v752_v41 }
 0x22b   : > { %v756_v44 = vsel %vm755_vm3, %v745_v38, %v753_v43 }
 0x22c   : > { %757 = vst [vmem:[#allocation4] sm:$0x3] %v756_v44 }
 0x22d PF: > { %s758_s28 = scalar_lea.vmem [#allocation2], %s868_s7 }
 0x22e   : > { %v759_v46 = vld [vmem:[%s758_s28] sm:$0xff]  ;;  %v760_v48 = vld [vmem:[%s758_s28 + $0x8] sm:$0xff] }
 0x233   : > { %v898_v45 = vld [vmem:[#allocation4] ss:$0 sm:$0xff]  ;;  %v899_v47 = vld [vmem:[#allocation4 + $0x1] ss:$0 sm:$0xff] }
 0x234   : > { %v766_v49 = vmul.f32 %v898_v45, %v759_v46  ;;  %v767_v50 = vmul.f32 %v898_v45, %v760_v48 }
 0x236   : > { %v773_v51 = vadd.f32 %v899_v47, %v766_v49  ;;  %v774_v52 = vadd.f32 %v899_v47, %v767_v50 }
 0x238   : > { %v775_v53 = vmax.f32 %v773_v51, 0.0  ;;  %v776_v54 = vmax.f32 %v774_v52, 0.0 }
 0x23a   : > { %777 = vst [vmem:[%s1225_s16] sm:$0xff] %v775_v53  ;;  %778 = vst [vmem:[%s1225_s16 + $0x8] sm:$0xff] %v776_v54 }
 0x23b PF: > { %s16_s25 = sadd.s32 1, %s1137_s25   ;;  %s1409_s21 = smov %s1129_s23 }
 0x23c   : > { %p13_p11 = scmp.ge.s32.totalorder %s16_s25, 6   ;;  %s1410_s22 = smov %s1133_s24 }
 0x23d   : > { %s1411_s23 = smov %s1414_s26  ;;  %s1412_s24 = smov %s1418_s27 }
 0x23e   :  { %15 = sbr.rel (!%p13_p11) target bundleno = 3 (0x3), region = 94 }

</bundles_post_ra>
